<compile_context>
chip_gen: v7x
topology: tpu7x:2x2x1
jax: 0.10.0
libtpu: 0.0.40
codegen_flags: <defaults>
</compile_context>

<pallas_src>
import jax
import jax.numpy as jnp
import numpy as np
from jax.experimental import pallas as pl
from jax.experimental.pallas import tpu as pltpu


def _mainloss_kernel(pred_ref, labels_ref, out_ref):
    logits = pred_ref[...].astype(jnp.float32)               # (TN, Cp), cast in-register
    tn, cp = logits.shape

    ids = jax.lax.broadcasted_iota(jnp.int32, (tn, cp), 1)   # column indices

    # Stable per-row log-sum-exp (pad lanes are -inf -> exp() == 0, so sums stay exact).
    m = jnp.max(logits, axis=1, keepdims=True)               # (TN, 1)
    shifted = logits - m                                     # (TN, Cp)
    s = jnp.sum(jnp.exp(shifted), axis=1, keepdims=True)     # (TN, 1)
    log_s = jnp.log(s)                                       # (TN, 1)
    log_sm = shifted - log_s                                 # (TN, Cp)  == log(softmax)

    # argmax(softmax) == argmax(logits); reuse the row max, first occurrence on ties.
    indx = jnp.min(jnp.where(logits == m, ids, cp), axis=1, keepdims=True)  # (TN,1) int32
    indx_f = indx.astype(jnp.float32)

    label = labels_ref[...]                                  # (TN, 1) int32
    label_f = label.astype(jnp.float32)

    # CrossEntropyLoss (batch-1 mean per row): -log_softmax at the label column.
    ce = -jnp.sum(jnp.where(ids == label, log_sm, 0.0), axis=1, keepdims=True)   # (TN, 1)

    # mloss = -[(1-indx)*log(softmax[indx]) + indx*(1 - log(softmax[indx]))]
    # and log(softmax[indx]) == shifted[indx] - log_s == -log_s   (shifted[indx] == 0),
    # so it reduces to a few per-row ops -- no mfull tensor, no second masked pick.
    mloss = (1.0 - indx_f) * log_s - indx_f * (1.0 + log_s)  # (TN, 1)

    # Dead code after exit() in the reference, reproduced for completeness:
    #   ce/2 if (argmax==1 and label==1) else 1 - argmax + (1 - label) + ce
    final = jnp.where(jnp.logical_and(indx == 1, label == 1),
                      ce * 0.5,
                      1.0 - indx_f + (1.0 - label_f) + ce)   # (TN, 1)

    # Single lane-dense, unmasked store: lane 0 = mloss, lane 1 = ce, lane 2 = final.
    lane = jax.lax.broadcasted_iota(jnp.int32, (tn, 128), 1)
    out_ref[...] = jnp.where(lane == 0, mloss,
                   jnp.where(lane == 1, ce,
                   jnp.where(lane == 2, final, 0.0)))


def main_loss(prediction, labels, *, row_tile=8):
    """prediction: (N, C) float logits (any float dtype); labels: (N,) int class ids.

    Each row is evaluated as one batch-1 MainLoss.forward. Returns a packed float32
    array of shape (N, 3) with columns [mloss, cross_entropy, final_loss].
    """
    n, c = prediction.shape
    assert labels.shape == (n,)

    cp = pl.cdiv(c, 128) * 128               # lane-multiple class axis -> unmasked reduces
    np_ = pl.cdiv(n, row_tile) * row_tile    # row padding for the grid

    # Pad classes with -inf (softmax-exact), pad extra rows with zeros (results discarded).
    pred_p = jnp.pad(prediction, ((0, 0), (0, cp - c)), constant_values=-jnp.inf)
    pred_p = jnp.pad(pred_p, ((0, np_ - n), (0, 0)))
    labels_p = jnp.pad(labels.astype(jnp.int32).reshape(n, 1), ((0, np_ - n), (0, 0)))

    packed = pl.pallas_call(
        _mainloss_kernel,
        out_shape=jax.ShapeDtypeStruct((np_, 128), jnp.float32),
        grid=(np_ // row_tile,),
        in_specs=[
            pl.BlockSpec((row_tile, cp), lambda i: (i, 0)),   # logits row tile (VMEM)
            pl.BlockSpec((row_tile, 1), lambda i: (i, 0)),    # labels row tile (VMEM)
        ],
        out_specs=pl.BlockSpec((row_tile, 128), lambda i: (i, 0)),
        compiler_params=pltpu.CompilerParams(
            dimension_semantics=("parallel",)),               # v7x: shard rows across TCs
    )(pred_p, labels_p)

    # Return one packed array (single slice), not three separate scalar slices.
    return packed[:n, :3]


def _reference(prediction, labels):
    # pure-JAX, row-wise reference of the same math (for a sanity check)
    pred = prediction.astype(jnp.float32)
    sm = jax.nn.softmax(pred, axis=1)
    log_sm = jax.nn.log_softmax(pred, axis=1)
    indx = jnp.argmax(sm, axis=1)
    indx_f = indx.astype(jnp.float32)
    rows = jnp.arange(pred.shape[0])
    picked = jnp.log(sm[rows, indx])
    mloss = -((1.0 - indx_f) * picked + indx_f * (1.0 - picked))
    ce = -log_sm[rows, labels]
    label_f = labels.astype(jnp.float32)
    final = jnp.where((indx == 1) & (labels == 1),
                      ce / 2.0,
                      1.0 - indx_f + (1.0 - label_f) + ce)
    return mloss, ce, final


if __name__ == "__main__":
    key = jax.random.PRNGKey(0)
    k1, k2 = jax.random.split(key)
    n, num_classes = 16, 10
    prediction = jax.random.normal(k1, (n, num_classes), dtype=jnp.float32)
    labels = jax.random.randint(k2, (n,), 0, num_classes, dtype=jnp.int32)

    packed = main_loss(prediction, labels)     # (N, 3): [mloss, ce, final]
    jax.block_until_ready(packed)

    mloss_ref, ce_ref, final_ref = _reference(prediction, labels)
    np.testing.assert_allclose(np.asarray(packed[:, 0]), np.asarray(mloss_ref),
                               rtol=1e-4, atol=1e-4)
    np.testing.assert_allclose(np.asarray(packed[:, 1]), np.asarray(ce_ref),
                               rtol=1e-4, atol=1e-4)
    np.testing.assert_allclose(np.asarray(packed[:, 2]), np.asarray(final_ref),
                               rtol=1e-4, atol=1e-4)

    print("KERNEL_OK")
</pallas_src>

<mosaic_0001>
module attributes {stable_mosaic.version = 11 : i64} {
  func.func @_mainloss_kernel(%arg0: i32, %arg1: memref<8x128xf32, #tpu.memory_space<vmem>>, %arg2: memref<8x1xi32, #tpu.memory_space<vmem>>, %arg3: memref<8x128xf32, #tpu.memory_space<vmem>>) attributes {dimension_semantics = [#tpu.dimension_semantics<parallel>], iteration_bounds = array<i64: 2>, scalar_prefetch = 0 : i64, scratch_operands = 0 : i64, tpu.core_type = #tpu.core_type<tc>, window_params = [{transform_indices = @transform_0, window_bounds = array<i64: 8, 128>}, {transform_indices = @transform_1, window_bounds = array<i64: 8, 1>}, {transform_indices = @transform_2, window_bounds = array<i64: 8, 128>}]} {
    %c0 = arith.constant 0 : index
    %c0_0 = arith.constant 0 : index
    %0 = vector.load %arg1[%c0, %c0_0] : memref<8x128xf32, #tpu.memory_space<vmem>>, vector<8x128xf32>
    %1 = tpu.iota {dimensions = array<i32: 1>} : vector<8x128xi32>
    %cst = arith.constant dense<0xFF800000> : vector<8xf32>
    %2 = vector.multi_reduction <maximumf>, %0, %cst [1] : vector<8x128xf32> to vector<8xf32>
    %3 = vector.shape_cast %2 : vector<8xf32> to vector<8x1xf32>
    %4 = vector.broadcast %3 : vector<8x1xf32> to vector<8x128xf32>
    %5 = arith.subf %0, %4 : vector<8x128xf32>
    %6 = math.exp %5 : vector<8x128xf32>
    %cst_1 = arith.constant dense<0.000000e+00> : vector<8xf32>
    %7 = vector.multi_reduction <add>, %6, %cst_1 [1] : vector<8x128xf32> to vector<8xf32>
    %8 = vector.shape_cast %7 : vector<8xf32> to vector<8x1xf32>
    %9 = math.log %8 : vector<8x1xf32>
    %10 = vector.broadcast %9 : vector<8x1xf32> to vector<8x128xf32>
    %11 = arith.subf %5, %10 : vector<8x128xf32>
    %12 = vector.broadcast %3 : vector<8x1xf32> to vector<8x128xf32>
    %13 = arith.cmpf oeq, %0, %12 : vector<8x128xf32>
    %c128_i32 = arith.constant 128 : i32
    %14 = vector.broadcast %c128_i32 : i32 to vector<8x128xi32>
    %15 = arith.select %13, %1, %14 : vector<8x128xi1>, vector<8x128xi32>
    %cst_2 = arith.constant dense<2147483647> : vector<8xi32>
    %16 = vector.multi_reduction <minsi>, %15, %cst_2 [1] : vector<8x128xi32> to vector<8xi32>
    %17 = vector.shape_cast %16 : vector<8xi32> to vector<8x1xi32>
    %18 = arith.sitofp %17 : vector<8x1xi32> to vector<8x1xf32>
    %c0_3 = arith.constant 0 : index
    %c0_4 = arith.constant 0 : index
    %19 = vector.load %arg2[%c0_3, %c0_4] : memref<8x1xi32, #tpu.memory_space<vmem>>, vector<8x1xi32>
    %20 = arith.sitofp %19 : vector<8x1xi32> to vector<8x1xf32>
    %21 = vector.broadcast %19 : vector<8x1xi32> to vector<8x128xi32>
    %22 = arith.cmpi eq, %1, %21 : vector<8x128xi32>
    %cst_5 = arith.constant 0.000000e+00 : f32
    %23 = vector.broadcast %cst_5 : f32 to vector<8x128xf32>
    %24 = arith.select %22, %11, %23 : vector<8x128xi1>, vector<8x128xf32>
    %cst_6 = arith.constant dense<0.000000e+00> : vector<8xf32>
    %25 = vector.multi_reduction <add>, %24, %cst_6 [1] : vector<8x128xf32> to vector<8xf32>
    %26 = vector.shape_cast %25 : vector<8xf32> to vector<8x1xf32>
    %cst_7 = arith.constant 0.000000e+00 : f32
    %27 = vector.broadcast %cst_7 : f32 to vector<8x1xf32>
    %28 = arith.subf %27, %26 : vector<8x1xf32>
    %cst_8 = arith.constant 1.000000e+00 : f32
    %29 = vector.broadcast %cst_8 : f32 to vector<8x1xf32>
    %30 = arith.subf %29, %18 : vector<8x1xf32>
    %31 = arith.mulf %30, %9 : vector<8x1xf32>
    %cst_9 = arith.constant 1.000000e+00 : f32
    %32 = vector.broadcast %cst_9 : f32 to vector<8x1xf32>
    %33 = arith.addf %32, %9 : vector<8x1xf32>
    %34 = arith.mulf %18, %33 : vector<8x1xf32>
    %35 = arith.subf %31, %34 : vector<8x1xf32>
    %c1_i32 = arith.constant 1 : i32
    %36 = vector.broadcast %c1_i32 : i32 to vector<8x1xi32>
    %37 = arith.cmpi eq, %17, %36 : vector<8x1xi32>
    %c1_i32_10 = arith.constant 1 : i32
    %38 = vector.broadcast %c1_i32_10 : i32 to vector<8x1xi32>
    %39 = arith.cmpi eq, %19, %38 : vector<8x1xi32>
    %40 = arith.andi %37, %39 : vector<8x1xi1>
    %cst_11 = arith.constant 5.000000e-01 : f32
    %41 = vector.broadcast %cst_11 : f32 to vector<8x1xf32>
    %42 = arith.mulf %28, %41 : vector<8x1xf32>
    %cst_12 = arith.constant 1.000000e+00 : f32
    %43 = vector.broadcast %cst_12 : f32 to vector<8x1xf32>
    %44 = arith.subf %43, %18 : vector<8x1xf32>
    %cst_13 = arith.constant 1.000000e+00 : f32
    %45 = vector.broadcast %cst_13 : f32 to vector<8x1xf32>
    %46 = arith.subf %45, %20 : vector<8x1xf32>
    %47 = arith.addf %44, %46 : vector<8x1xf32>
    %48 = arith.addf %47, %28 : vector<8x1xf32>
    %49 = arith.select %40, %42, %48 : vector<8x1xi1>, vector<8x1xf32>
    %50 = tpu.iota {dimensions = array<i32: 1>} : vector<8x128xi32>
    %c0_i32 = arith.constant 0 : i32
    %51 = vector.broadcast %c0_i32 : i32 to vector<8x128xi32>
    %52 = arith.cmpi eq, %50, %51 : vector<8x128xi32>
    %c1_i32_14 = arith.constant 1 : i32
    %53 = vector.broadcast %c1_i32_14 : i32 to vector<8x128xi32>
    %54 = arith.cmpi eq, %50, %53 : vector<8x128xi32>
    %c2_i32 = arith.constant 2 : i32
    %55 = vector.broadcast %c2_i32 : i32 to vector<8x128xi32>
    %56 = arith.cmpi eq, %50, %55 : vector<8x128xi32>
    %cst_15 = arith.constant 0.000000e+00 : f32
    %57 = vector.shape_cast %49 : vector<8x1xf32> to vector<8x1xf32>
    %58 = vector.broadcast %57 : vector<8x1xf32> to vector<8x128xf32>
    %59 = vector.broadcast %cst_15 : f32 to vector<8x128xf32>
    %60 = arith.select %56, %58, %59 : vector<8x128xi1>, vector<8x128xf32>
    %61 = vector.shape_cast %28 : vector<8x1xf32> to vector<8x1xf32>
    %62 = vector.broadcast %61 : vector<8x1xf32> to vector<8x128xf32>
    %63 = arith.select %54, %62, %60 : vector<8x128xi1>, vector<8x128xf32>
    %64 = vector.shape_cast %35 : vector<8x1xf32> to vector<8x1xf32>
    %65 = vector.broadcast %64 : vector<8x1xf32> to vector<8x128xf32>
    %66 = arith.select %52, %65, %63 : vector<8x128xi1>, vector<8x128xf32>
    %c0_16 = arith.constant 0 : index
    %c0_17 = arith.constant 0 : index
    %67 = vector.load %arg3[%c0_16, %c0_17] : memref<8x128xf32, #tpu.memory_space<vmem>>, vector<8x128xf32>
    tpu.vector_store %arg3[%c0_16, %c0_17], %66 {strides = array<i32>} : memref<8x128xf32, #tpu.memory_space<vmem>>, vector<8x128xf32>,
    return
  }
  func.func @transform_0(%arg0: i32) -> (i32, i32) {
    %c0_i32 = arith.constant 0 : i32
    %c0_i32_0 = arith.constant 0 : i32
    return %arg0, %c0_i32 : i32, i32
  }
  func.func @transform_1(%arg0: i32) -> (i32, i32) {
    %c0_i32 = arith.constant 0 : i32
    %c0_i32_0 = arith.constant 0 : i32
    return %arg0, %c0_i32 : i32, i32
  }
  func.func @transform_2(%arg0: i32) -> (i32, i32) {
    %c0_i32 = arith.constant 0 : i32
    %c0_i32_0 = arith.constant 0 : i32
    return %arg0, %c0_i32 : i32, i32
  }
}

</mosaic_0001>

<bundles_post_ra>
// kernel: tpu_custom_call.1
= control target key start
LH: loop header
LB: loop body
LE: loop exit
PB: predicated region body
PF: predicated region fallthrough
CT: control target
= control target key end

     0   :  { %7 = vsyncpa [#allocation3], 0  ;;  %s554_s0 = inlined_call_operand.vmem [shape: f32[16,128], index: 0, kind: input, shape index: {}]   ;;  %s555_s1 = inlined_call_operand.vmem [shape: s32[16,1], index: 1, kind: input, shape index: {}]   ;;  %s556_s2 = inlined_call_operand.hbm [shape: f32[16,128], index: 2, kind: output, shape index: {}]  }
   0x1   :  { %9 = vsyncpa [#allocation3 + $0x1], 0  ;;  %s444_s9 = smov 0   ;;  %s446_s10 = smov 0  }
   0x2   :  { %s448_s11 = smov 0   ;;  %s450_s12 = smov 0  }
   0x3 LB: > { %s465_s13 = sadd.s32 4294967295, %s425_s12   ;;  %s306_s14 = sadd.s32 4294967294, %s425_s12   ;;  %s425_s12 = sphi %s450_s12, %s562_s12   ;;  %s421_s11 = sphi %s448_s11, %s561_s11   ;;  %s417_s10 = sphi %s446_s10, %s560_s10   ;;  %s413_s9 = sphi %s444_s9, %s559_s9  }
   0x4   : > { %s469_s15 = sadd.s32 1, %s425_s12   ;;  %s74_s16 = sadd.s32 1, %s421_s11 }
   0x5   : > { %s71_s17 = ssub.s32 %s425_s12, %s469_s15  ;;  %p84_p0 = scmp.ne.s32.totalorder %s421_s11, %s417_s10 }
   0x6   : > { %p72_p1 = scmp.eq.s32.totalorder %s71_s17, 0  ;;  %p85_p2 = scmp.eq.s32.totalorder %s465_s13, 1 }
   0x7   : > { %p90_p3 = scmp.ne.s32.totalorder %s417_s10, %s413_s9  ;;  %p91_p4 = scmp.eq.s32.totalorder %s306_s14, 1 }
   0x8   : > { %s480_s18 = scalar_select %p72_p1, %s421_s11, %s74_s16  }
   0x9   : > { %p482_p5 = por %p85_p2, %p84_p0  ;;  %p486_p6 = por %p91_p4, %p90_p3 }
   0xa   : > { %p309_p7 = scmp.ge.s32.totalorder %s425_s12, 1  ;;  %p123_p8 = scmp.lt.s32.totalorder %s425_s12, 3 }
   0xc   : > { %p124_p9 = pnand %p309_p7, %p123_p8 }
   0xd   : > { %p148_p10 = scmp.lt.s32.totalorder (!%p124_p9), %s465_s13, 1  ;;  %v427_v1 = vmov (!%p124_p9), 0   ;;  %v157_v2 = vlaneseq (!%p124_p9)  ;;  %s145_s29 = sand.u32 (!%p124_p9), 1, %s417_s10  }
   0xe   : > { %127 = sbr.rel (%p124_p9) target bundleno = 633 (0x279), region = 28  ;;  %357 = vset.pattern.permute.xlu1 (!%p124_p9), %v427_v1  ;;  %358 = vset.pattern.permute.xlu0 (!%p124_p9), %v427_v1  ;;  %s310_s30 = sshll.u32 (!%p124_p9), %s145_s29, 3 }
   0xf   : > { %v497_v3 = vand.u32 (!%p124_p9), 127, %v157_v2  ;;  %s314_s3 = sshll.u32 (!%p124_p9), %s465_s13, 7  ;;  %s147_s4 = scalar_lea.vmem (!%p124_p9), [#allocation2], %s310_s30 }
  0x10   : > { %s235_s5 = sshll.u32 (!%p124_p9), %s147_s4, 4  ;;  %s512_s8 = scalar_lea.hbm (!%p124_p9), %s556_s2, %s314_s3  ;;  %s514_s5 = int_to_ptr.vmem [resolvable:$true] %s235_s5 }
  0x11   : > { %vm211_vm6 = vcmp.eq.s32.totalorder (!%p124_p9), %v497_v3, 2  ;;  %vm210_vm7 = vcmp.eq.s32.totalorder (!%p124_p9), %v497_v3, 1  ;;  %vm209_vm8 = vcmp.eq.s32.totalorder (!%p124_p9), %v497_v3, 0  ;;  %s363_s14 = scalar_lea.vmem (!%p124_p9), %s514_s5, 128  ;;  %s428_s16 = smov (!%p124_p9), [#allocation2]  }
  0x12   : > { %p364_p11 = scmp.ne.s32.totalorder (!%p124_p9), %s514_s5, %s363_s14  ;;  %s367_s17 = sshll.u32 (!%p124_p9), %s428_s16, 4  ;;  %s368_s17 = int_to_ptr.vmem [resolvable:$false] %s367_s17 }
  0x13   : > { %p370_p0 = scmp.lt.s32.totalorder (!%p124_p9), %s514_s5, %s368_s17 }
  0x14   : > { %p365_p12 = pnand (!%p124_p9), %p364_p11, %p482_p5 }
  0x15   : > { %s149_s21 = scalar_select %p148_p10, %s465_s13, 1 }
  0x16   : > { %s222_s13 = scalar_lea.sflag [#allocation3], %s145_s29  ;;  %p366_p13 = pneg %p365_p12 }
  0x17   : > { %s311_s22 = sshll.u32 %s149_s21, 3  ;;  %s369_s21 = scalar_lea.vmem %s368_s17, 256 }
  0x18   : > { %s151_s25 = scalar_lea.vmem %s554_s0, %s311_s22  ;;  %s155_s28 = scalar_lea.vmem %s555_s1, %s311_s22 }
  0x19   : > { %v156_v0 = vld [vmem:[%s151_s25] sm:$0xff]  ;;  %p371_p1 = scmp.lt.s32.totalorder %s369_s21, %s363_s14 }
  0x1a   : > { %159 = vmax.xlane.f32.xlu0 %v156_v0  ;;  %v186_v11 = vld [vmem:[%s155_s28] sm:$0xff] }
  0x1b   : > { %v187_v33 = vcvt.s32.f32 %v186_v11  ;;  %vm202_vm3 = vcmp.eq.s32.totalorder %v186_v11, 1  ;;  %p372_p2 = por %p371_p1, %p370_p0 }
  0x1d   : > { %v205_v34 = vsub.f32 1.0, %v187_v33  ;;  %p373_p3 = pnand %p372_p2, %p366_p13 }
  0xa7   : > { %v160_v4 = vpop.xlane.xlu0 %159 }
  0xa8   : > { %v161_v5 = vsub.f32 %v156_v0, %v160_v4  ;;  %vm169_vm0 = vcmp.eq.f32.partialorder %v156_v0, %v160_v4 }
  0xa9   : > { %v170_v6 = vsel %vm169_vm0, %v497_v3, 128 }
  0xaa   : > { %v162_v7 = vmul.f32 1.442695, %v161_v5  ;;  %v172_v8 = vshra.s32 %v170_v6, 16  ;;  %v171_v12 = vand.u32 65535, %v170_v6 }
  0xac   : > { %359 = vpow2.f32 %v162_v7  ;;  %v174_v9 = vcvt.s32.f32 %v172_v8  ;;  %v173_v14 = vcvt.s32.f32 %v171_v12 }
  0xae   : > { %175 = vmin.xlane.f32.xlu1 %v174_v9 }
  0xb6   : > { %v360_v10 = vpop.eup %359 }
  0xb7   : > { %164 = vadd.xlane.f32.xlu0 %v360_v10 }
  0xbf   : > { %189 = vperm.xlu1 %357, %v186_v11  }
 0x13b   : > { %v176_v13 = vpop.xlane.xlu1 %175 }
 0x13c   : > { %vm177_vm1 = vcmp.eq.f32.partialorder %v174_v9, %v176_v13  ;;  %v182_v22 = vcvt.f32.s32 %v176_v13 }
 0x13d   : > { %v178_v15 = vsel %vm177_vm1, %v173_v14, inf }
 0x13e   : > { %179 = vmin.xlane.f32.xlu0 %v178_v15  ;;  %v183_v24 = vshll.u32 %v182_v22, 16 }
 0x13f   : > { %v190_v17 = vpop.permute.xlu1 %189 }
 0x140   : > { %vm191_vm2 = vcmp.eq.s32.totalorder %v497_v3, %v190_v17 }
 0x144   : > { %v165_v16 = vpop.xlane.xlu0 %164 }
 0x145   : > { %361 = vlog2.f32 %v165_v16 }
 0x14f   : > { %v362_v18 = vpop.eup %361 }
 0x150   : > { %v167_v19 = vmul.f32 0.6931472, %v362_v18 }
 0x152   : > { %v168_v20 = vsub.f32 %v161_v5, %v167_v19  ;;  %v198_v28 = vadd.f32 1.0, %v167_v19 }
 0x154   : > { %v192_v21 = vsel %vm191_vm2, %v168_v20, 0.0 }
 0x155   : > { %193 = vadd.xlane.f32.xlu0 %v192_v21 }
 0x1cb   : > { %v180_v23 = vpop.xlane.xlu0 %179 }
 0x1cc   : > { %v181_v25 = vcvt.f32.s32 %v180_v23 }
 0x1ce   : > { %v184_v26 = vadd.s32 %v183_v24, %v181_v25 }
 0x1d0   : > { %v185_v27 = vcvt.s32.f32 %v184_v26  ;;  %vm201_vm4 = vcmp.eq.s32.totalorder %v184_v26, 1 }
 0x1d1   : > { %vm203_vm5 = vmand %vm201_vm4, %vm202_vm3 }
 0x1d2   : > { %v196_v29 = vsub.f32 1.0, %v185_v27  ;;  %v199_v31 = vmul.f32 %v198_v28, %v185_v27 }
 0x1d4   : > { %v197_v30 = vmul.f32 %v196_v29, %v167_v19  ;;  %v206_v36 = vadd.f32 %v205_v34, %v196_v29 }
 0x1d6   : > { %v200_v32 = vsub.f32 %v197_v30, %v199_v31 }
 0x1e2   : > { %v194_v35 = vpop.xlane.xlu0 %193 }
 0x1e3   : > { %v195_v37 = vsub.f32 0.0, %v194_v35 }
 0x1e5   : > { %v204_v38 = vmul.f32 0.5, %v195_v37  ;;  %v207_v39 = vadd.f32 %v206_v36, %v195_v37 }
 0x1e7   : > { %v208_v40 = vsel %vm203_vm5, %v204_v38, %v207_v39 }
 0x1e8   : > { %214 = vperm.xlu0 %358, %v208_v40  }
 0x267   : > { %v215_v41 = vpop.permute.xlu0 %214 }
 0x268   : > { %v217_v42 = vsel %vm211_vm6, %v215_v41, 0.0 }
 0x269   : > { %v218_v43 = vsel %vm210_vm7, %v195_v37, %v217_v42 }
 0x26a   : > { %v219_v44 = vsel %vm209_vm8, %v200_v32, %v218_v43 }
 0x26b   : > { %220 = vst [vmem:[%s147_s4] sm:$0xff] %v219_v44 }
 0x26c   : > { %376 = shalt.err (!%p373_p3)
}
 0x26d   : > { %s377_s22 = scalar_lea.hbm %s512_s8, 128  ;;  %s381_s25 = scalar_lea.hbm %s556_s2, 256 }
 0x26e   : > { %p378_p4 = scmp.ne.s32.totalorder %s512_s8, %s377_s22  ;;  %p382_p9 = scmp.lt.u32.totalorder %s512_s8, %s556_s2 }
 0x26f   : > { %p383_p10 = scmp.lt.u32.totalorder %s381_s25, %s377_s22  ;;  %p385_p12 = scmp.lt.u32.totalorder %s377_s22, %s512_s8 }
 0x270   : > { %p379_p7 = pnand %p378_p4, %p482_p5 }
 0x271   : > { %p384_p11 = por %p383_p10, %p382_p9 }
 0x272   : > { %p380_p8 = pneg %p379_p7 }
 0x273   : > { %p386_p13 = por %p385_p12, %p384_p11 }
 0x275   : > { %p387_p0 = pnand %p386_p13, %p380_p8 }
 0x277   : > { %390 = shalt.err (!%p387_p0)
}
 0x278   : > { %317 = dma.vmem_to_hbm [thread:$0]  (%p482_p5), %s514_s5, 128, %s512_s8, %s222_s13  }
 0x279 PF: > { %p323_p1 = scmp.ge.s32.totalorder %s425_s12, 2  ;;  %s247_s28 = sand.u32 1, %s413_s9  }
 0x27a   : > { %s248_s29 = scalar_lea.sflag [#allocation3], %s247_s28 }
 0x27b   : > { %p320_p2 = pnand %p323_p1, %p486_p6 }
 0x27d   : > { %408 = dma.done.wait (!%p320_p2), %s248_s29, 128  }
 0x27e   : > { %410 = vsyncadd (!%p320_p2), %s248_s29, 4294967168  ;;  %p12_p3 = scmp.ge.s32.totalorder %s469_s15, 4   ;;  %s559_s9 = smov %s417_s10 }
 0x27f   : > { %s560_s10 = smov %s421_s11  ;;  %s561_s11 = smov %s480_s18 }
 0x280   : > { %s562_s12 = smov %s469_s15  ;;  %14 = sbr.rel (!%p12_p3) target bundleno = 3 (0x3), region = 66 }
 0x287   :  { %253 = vsyncpa [#allocation3], 1 }
 0x288   :  { %255 = vsyncpa [#allocation3 + $0x1], 1 }

</bundles_post_ra>
